<compile_context>
chip_gen: v6e
topology: v6e:2x2x1
jax: 0.10.0
libtpu: 0.0.40
codegen_flags: <defaults>
</compile_context>

<pallas_src>
import jax
import jax.numpy as jnp
from jax.experimental import pallas as pl
from jax.experimental.pallas import tpu as pltpu


def _freq_attn_kernel(u_ref, wt_ref, out_ref, att_ref):
    # u_ref:   (Bt, C, HW)  input slab (HW on lanes, C on sublanes)
    # wt_ref:  (C, C)       (W_excite @ W_squeeze).T, float32
    # out_ref: (Bt, C, HW)  U * sigmoid(z)
    # att_ref: (1, Bt, C)   pre-sigmoid logits, float32, lane-dense
    # AdaptiveAvgPool2d(1): per-(batch, channel) spatial mean, f32 accumulation.
    pooled = jnp.mean(u_ref[...], axis=-1, dtype=jnp.float32)             # (Bt, C)
    # Fused Conv_Excitation(Conv_Squeeze(.)): one 2-D MXU matmul.
    z = jnp.dot(pooled, wt_ref[...], preferred_element_type=jnp.float32)  # (Bt, C)
    att_ref[...] = z[None, :, :]
    # Gate in the input dtype; broadcast the per-(b, c) gate over the lane axis.
    gate = jax.nn.sigmoid(z)[:, :, None].astype(u_ref.dtype)              # (Bt, C, 1)
    out_ref[...] = (u_ref[...] * gate).astype(out_ref.dtype)


def _vmem_budget_bytes():
    """(physical VMEM, usable budget = 75% of it); conservative fallback = 64 MiB."""
    cap = 64 << 20  # v7x per-TensorCore VMEM (the smallest of v5e/v6e/v7x)
    try:
        info = pltpu.get_tpu_info()
        cap = int(getattr(info, "vmem_capacity_bytes", cap)) or cap
    except Exception:
        pass
    return cap, int(0.75 * cap)


def _choose_block_batch(B, per_elem_bytes, target_block_bytes, quad_budget_bytes):
    """Largest divisor of B whose (Bt, C, HW) slab meets the DMA-size target and
    whose double-buffered in+out copies fit the VMEM budget."""
    if 4 * per_elem_bytes > quad_budget_bytes:
        # TODO(synk): tile the H*W axis (two-pass pooled-mean then gating) when a
        # single (1, C, H*W) slab exceeds the per-block VMEM budget.
        raise ValueError(
            f"frequency_attention: a single (1, C, H*W) slab needs "
            f"{4 * per_elem_bytes} bytes of double-buffered VMEM, exceeding the "
            f"budget of {quad_budget_bytes} bytes; H*W tiling is not implemented.")
    legal = [d for d in range(1, B + 1)
             if B % d == 0 and 4 * d * per_elem_bytes <= quad_budget_bytes]
    under = [d for d in legal if d * per_elem_bytes <= target_block_bytes]
    bt = max(under) if under else min(legal)
    # v7x megacore: prefer >= 2 grid steps, but only if blocks stay >= half the
    # DMA target (single-TC v5e/v6e lose nothing since blocks stay large).
    if B // bt < 2:
        multi = [d for d in legal if B // d >= 2]
        if multi and max(multi) * per_elem_bytes * 2 >= target_block_bytes:
            bt = max(multi)
    return bt


def frequency_attention(U, w_squeeze, w_excite):
    """U: (B, C, H, W); w_squeeze: (C//2, C, 1, 1); w_excite: (C, C//2, 1, 1)."""
    B, C, H, W = U.shape
    HW = H * W
    U3 = U.reshape(B, C, HW)

    # Fuse the two bias-free 1x1 convs (no nonlinearity between them -- exact),
    # pre-transposed so the kernel runs a plain (Bt, C) @ (C, C) matmul.
    w1 = w_squeeze.reshape(C // 2, C).astype(jnp.float32)
    w2 = w_excite.reshape(C, C // 2).astype(jnp.float32)
    w_t = jnp.dot(w2, w1, precision=jax.lax.Precision.HIGHEST).T          # (C, C)

    itemsize = jnp.dtype(U.dtype).itemsize
    per_elem_bytes = C * HW * itemsize

    vmem_cap, vmem_budget = _vmem_budget_bytes()
    quad_budget = vmem_budget - (4 << 20)          # headroom for weight/att/scratch
    target_block = min(8 << 20, max(1 << 20, quad_budget // 4))
    Bt = _choose_block_batch(B, per_elem_bytes, target_block, quad_budget)
    G = B // Bt
    grid = (G,)

    block_bytes = Bt * per_elem_bytes
    vmem_needed = (2 * 2 * block_bytes             # U in + gated out, double-buffered
                   + 2 * Bt * C * 4                # freqAtten blocks
                   + 2 * C * C * 4                 # fused weight
                   + (2 << 20))                    # compiler scratch headroom
    assert vmem_needed <= vmem_budget, (vmem_needed, vmem_budget)
    vmem_limit = int(min(vmem_budget, max(vmem_needed, min(32 << 20, vmem_budget))))

    out3, att = pl.pallas_call(
        _freq_attn_kernel,
        grid=grid,
        in_specs=[
            pl.BlockSpec((Bt, C, HW), lambda b: (b, 0, 0)),
            pl.BlockSpec((C, C), lambda b: (0, 0)),
        ],
        out_specs=(
            pl.BlockSpec((Bt, C, HW), lambda b: (b, 0, 0)),
            pl.BlockSpec((1, Bt, C), lambda b: (b, 0, 0)),
        ),
        out_shape=(
            jax.ShapeDtypeStruct((B, C, HW), U.dtype),
            jax.ShapeDtypeStruct((G, Bt, C), jnp.float32),
        ),
        compiler_params=pltpu.CompilerParams(
            dimension_semantics=("parallel",),
            vmem_limit_bytes=vmem_limit,
        ),
        # TODO(synk): pass input_output_aliases={0: 0} when the caller donates U
        # (halves HBM residency of the big tensor; traffic is unchanged).
    )(U3, w_t)

    # freqAtten == torch.squeeze(z, 3) -> (B, C, 1), in the activation dtype.
    freq_atten = att.reshape(B, C, 1).astype(U.dtype)
    return out3.reshape(B, C, H, W), freq_atten


def _reference(U, w_squeeze, w_excite):
    """Unfused pure-JAX reference (validates the on-host weight fusion too)."""
    B, C, H, W = U.shape
    hp = jax.lax.Precision.HIGHEST
    pooled = jnp.mean(U, axis=(2, 3))                                   # (B, C)
    s = jnp.dot(pooled, w_squeeze.reshape(C // 2, C).T, precision=hp)   # (B, C//2)
    z = jnp.dot(s, w_excite.reshape(C, C // 2).T, precision=hp)         # (B, C)
    att = z[:, :, None]                                                 # (B, C, 1)
    gate = jax.nn.sigmoid(z)[:, :, None, None]                          # (B, C, 1, 1)
    return U * gate, att


if __name__ == "__main__":
    B, C, H, W = 2, 8, 16, 16
    key = jax.random.PRNGKey(0)
    k_u, k_w1, k_w2 = jax.random.split(key, 3)

    U = jax.random.normal(k_u, (B, C, H, W), dtype=jnp.float32)
    # Deterministic synthetic Conv2d weights (out, in, 1, 1), no bias.
    w_squeeze = 0.1 * jax.random.normal(k_w1, (C // 2, C, 1, 1), dtype=jnp.float32)
    w_excite = 0.1 * jax.random.normal(k_w2, (C, C // 2, 1, 1), dtype=jnp.float32)

    out, freq_atten = frequency_attention(U, w_squeeze, w_excite)
    out = jax.block_until_ready(out)
    freq_atten = jax.block_until_ready(freq_atten)

    ref_out, ref_att = _reference(U, w_squeeze, w_excite)
    assert out.shape == (B, C, H, W) and freq_atten.shape == (B, C, 1)
    assert jnp.allclose(out, ref_out, rtol=1e-4, atol=1e-5), \
        float(jnp.max(jnp.abs(out - ref_out)))
    assert jnp.allclose(freq_atten, ref_att.astype(freq_atten.dtype),
                        rtol=1e-4, atol=1e-5), \
        float(jnp.max(jnp.abs(freq_atten - ref_att)))

    print("KERNEL_OK")
</pallas_src>

<mosaic_0001>
module attributes {stable_mosaic.version = 11 : i64} {
  func.func @_freq_attn_kernel(%arg0: i32, %arg1: memref<2x8x256xf32, #tpu.memory_space<vmem>>, %arg2: memref<8x8xf32, #tpu.memory_space<vmem>>, %arg3: memref<2x8x256xf32, #tpu.memory_space<vmem>>, %arg4: memref<1x2x8xf32, #tpu.memory_space<vmem>>) attributes {dimension_semantics = [#tpu.dimension_semantics<parallel>], iteration_bounds = array<i64: 1>, scalar_prefetch = 0 : i64, scratch_operands = 0 : i64, tpu.core_type = #tpu.core_type<tc>, window_params = [{transform_indices = @transform_0, window_bounds = array<i64: 2, 8, 256>}, {pipeline_mode = #tpu.pipeline_mode<synchronous>, transform_indices = @transform_1, window_bounds = array<i64: 8, 8>}, {transform_indices = @transform_2, window_bounds = array<i64: 2, 8, 256>}, {transform_indices = @transform_3, window_bounds = array<i64: 1, 2, 8>}]} {
    %c0 = arith.constant 0 : index
    %c0_0 = arith.constant 0 : index
    %c0_1 = arith.constant 0 : index
    %0 = vector.load %arg1[%c0, %c0_0, %c0_1] : memref<2x8x256xf32, #tpu.memory_space<vmem>>, vector<2x8x256xf32>
    %cst = arith.constant dense<0.000000e+00> : vector<2x8xf32>
    %1 = vector.multi_reduction <add>, %0, %cst [2] : vector<2x8x256xf32> to vector<2x8xf32>
    %cst_2 = arith.constant 2.560000e+02 : f32
    %2 = vector.broadcast %cst_2 : f32 to vector<2x8xf32>
    %3 = arith.divf %1, %2 : vector<2x8xf32>
    %c0_3 = arith.constant 0 : index
    %c0_4 = arith.constant 0 : index
    %4 = vector.load %arg2[%c0_3, %c0_4] : memref<8x8xf32, #tpu.memory_space<vmem>>, vector<8x8xf32>
    %cst_5 = arith.constant dense<0.000000e+00> : vector<2x8xf32>
    %5 = tpu.matmul %3, %4, %cst_5 {dimension_numbers = #tpu.dot_dimension_numbers<[1], [0], [0], [1], [0, 0, 1, 1], [], []>} : vector<2x8xf32>, vector<8x8xf32>, vector<2x8xf32> -> vector<2x8xf32>
    %6 = vector.shape_cast %5 : vector<2x8xf32> to vector<1x2x8xf32>
    %c0_6 = arith.constant 0 : index
    %c0_7 = arith.constant 0 : index
    %c0_8 = arith.constant 0 : index
    %7 = vector.load %arg4[%c0_6, %c0_7, %c0_8] : memref<1x2x8xf32, #tpu.memory_space<vmem>>, vector<1x2x8xf32>
    tpu.vector_store %arg4[%c0_6, %c0_7, %c0_8], %6 {strides = array<i32>} : memref<1x2x8xf32, #tpu.memory_space<vmem>>, vector<1x2x8xf32>,
    %8 = arith.negf %5 : vector<2x8xf32>
    %9 = math.exp %8 : vector<2x8xf32>
    %cst_9 = arith.constant 1.000000e+00 : f32
    %10 = vector.broadcast %cst_9 : f32 to vector<2x8xf32>
    %11 = arith.addf %10, %9 : vector<2x8xf32>
    %12 = arith.divf %10, %11 : vector<2x8xf32>
    %13 = vector.shape_cast %12 : vector<2x8xf32> to vector<2x8x1xf32>
    %c0_10 = arith.constant 0 : index
    %c0_11 = arith.constant 0 : index
    %c0_12 = arith.constant 0 : index
    %14 = vector.load %arg1[%c0_10, %c0_11, %c0_12] : memref<2x8x256xf32, #tpu.memory_space<vmem>>, vector<2x8x256xf32>
    %15 = vector.broadcast %13 : vector<2x8x1xf32> to vector<2x8x256xf32>
    %16 = arith.mulf %14, %15 : vector<2x8x256xf32>
    %c0_13 = arith.constant 0 : index
    %c0_14 = arith.constant 0 : index
    %c0_15 = arith.constant 0 : index
    %17 = vector.load %arg3[%c0_13, %c0_14, %c0_15] : memref<2x8x256xf32, #tpu.memory_space<vmem>>, vector<2x8x256xf32>
    tpu.vector_store %arg3[%c0_13, %c0_14, %c0_15], %16 {strides = array<i32>} : memref<2x8x256xf32, #tpu.memory_space<vmem>>, vector<2x8x256xf32>,
    return
  }
  func.func @transform_0(%arg0: i32) -> (i32, i32, i32) {
    %c0_i32 = arith.constant 0 : i32
    %c0_i32_0 = arith.constant 0 : i32
    %c0_i32_1 = arith.constant 0 : i32
    return %arg0, %c0_i32, %c0_i32_0 : i32, i32, i32
  }
  func.func @transform_1(%arg0: i32) -> (i32, i32) {
    %c0_i32 = arith.constant 0 : i32
    %c0_i32_0 = arith.constant 0 : i32
    %c0_i32_1 = arith.constant 0 : i32
    return %c0_i32, %c0_i32_0 : i32, i32
  }
  func.func @transform_2(%arg0: i32) -> (i32, i32, i32) {
    %c0_i32 = arith.constant 0 : i32
    %c0_i32_0 = arith.constant 0 : i32
    %c0_i32_1 = arith.constant 0 : i32
    return %arg0, %c0_i32, %c0_i32_0 : i32, i32, i32
  }
  func.func @transform_3(%arg0: i32) -> (i32, i32, i32) {
    %c0_i32 = arith.constant 0 : i32
    %c0_i32_0 = arith.constant 0 : i32
    %c0_i32_1 = arith.constant 0 : i32
    return %arg0, %c0_i32, %c0_i32_0 : i32, i32, i32
  }
}

</mosaic_0001>

<bundles_post_ra>
// kernel: tpu_custom_call.1
= control target key start
LH: loop header
LB: loop body
LE: loop exit
PB: predicated region body
PF: predicated region fallthrough
CT: control target
= control target key end

     0   :  { %9 = vsyncpa [#allocation3], 0  ;;  %s363_s0 = inlined_call_operand.hbm [shape: f32[2,8,256], index: 0, kind: input, shape index: {}]   ;;  %s364_s1 = inlined_call_operand.hbm [shape: f32[8,8], index: 1, kind: input, shape index: {}]   ;;  %s365_s2 = inlined_call_operand.hbm [shape: f32[2,8,256], index: 2, kind: output, shape index: {0}]   ;;  %s366_s3 = inlined_call_operand.hbm [shape: f32[1,2,8], index: 3, kind: output, shape index: {1}]  }
   0x1   :  { %10 = vsyncpa [#allocation6], 0 }
   0x2   :  { %11 = vsyncpa [#allocation4], 0 }
   0x3   :  { %12 = vsyncpa [#allocation9], 0  ;;  %s317_s12 = smov [#allocation2]  }
   0x4   :  { %s18_s13 = sshll.u32 %s317_s12, 4  ;;  %s19_s13 = int_to_ptr.vmem [resolvable:$true] %s18_s13 }
   0x5   :  { %s237_s14 = scalar_lea.vmem %s19_s13, 512  ;;  %p242_p1 = scmp.lt.s32.totalorder %s19_s13, %s19_s13 }
   0x6   :  { %p238_p0 = scmp.ne.s32.totalorder %s19_s13, %s237_s14  ;;  %p243_p2 = scmp.lt.s32.totalorder %s237_s14, %s237_s14 }
   0x8   :  { %p244_p3 = por %p243_p2, %p242_p1 }
   0xa   :  { %p245_p4 = pnand %p244_p3, %p238_p0 }
   0xc   :  { %248 = shalt.err (!%p245_p4)
}
   0xd   :  { %s318_s15 = smov 256   ;;  %s319_s16 = smov 16  }
   0xe   :  { %24 = dma.hbm_to_vmem [thread:$0]  %s363_s0, 512, %s19_s13, [#allocation3], %s318_s15, %s318_s15, %s319_s16  }
   0xf   :  { %s320_s19 = smov [#allocation5]  }
  0x10   :  { %s31_s20 = sshll.u32 %s320_s19, 4  ;;  %s32_s20 = int_to_ptr.vmem [resolvable:$true] %s31_s20 }
  0x11   :  { %s257_s21 = scalar_lea.vmem %s32_s20, 128  ;;  %p262_p6 = scmp.lt.s32.totalorder %s32_s20, %s32_s20 }
  0x12   :  { %p258_p5 = scmp.ne.s32.totalorder %s32_s20, %s257_s21  ;;  %p263_p7 = scmp.lt.s32.totalorder %s257_s21, %s257_s21 }
  0x14   :  { %p264_p8 = por %p263_p7, %p262_p6 }
  0x16   :  { %p265_p9 = pnand %p264_p8, %p258_p5 }
  0x18   :  { %268 = shalt.err (!%p265_p9)
}
  0x19   :  { %34 = dma.hbm_to_vmem [thread:$0]  %s364_s1, 128, %s32_s20, [#allocation6]  }
  0x1a   :  { %309 = dma.done.wait [#allocation3], 512  }
  0x1b   :  { %310 = vsyncadd [#allocation3], 4294966784 }
  0x1c   :  { %311 = dma.done.wait [#allocation6], 128  }
  0x1d   :  { %312 = vsyncadd [#allocation6], 4294967168  ;;  %v41_v0 = vld [vmem:[#allocation2] sm:$0xff]  ;;  %v42_v1 = vld [vmem:[#allocation2 + $0x8] sm:$0xff]  ;;  %v321_v7 = vmov 0.0   ;;  %vm322_vm0 = vmmov 0   ;;  %v57_v8 = vlaneseq }
  0x1e   :  { %v43_v2 = vld [vmem:[#allocation2 + $0x10] sm:$0xff]  ;;  %v45_v3 = vadd.f32 %v42_v1, %v41_v0  ;;  %v44_v4 = vld [vmem:[#allocation2 + $0x18] sm:$0xff]  ;;  %v54_v6 = vld [vmem:[#allocation5] sm:$0xff]  ;;  %212 = vmatprep.subr.mxu0 %v321_v7  ;;  %214 = vmatprep.mubr.msk.f32.mxu0 %vm322_vm0, %v321_v7  ;;  %vm67_vm1 = vcmask 1041409   ;;  %vm69_vm2 = vcmask 64512   ;;  %vm142_vm3 = vcmask 58368  }
  0x1f   :  { %v48_v5 = vadd.f32 %v44_v4, %v43_v2  ;;  %213 = vmatpush3.msra.mxu0 %v54_v6  ;;  %v58_v9 = vand.u32 127, %v57_v8  ;;  %v60_v10 = vshrl.u32 %v57_v8, 7  ;;  %s323_s0 = smov [#allocation8]  }
  0x20   :  { %46 = vadd.xlane.f32.xlu0 %v45_v3  ;;  %s194_s1 = sshll.u32 %s323_s0, 4  ;;  %s195_s1 = int_to_ptr.vmem [resolvable:$true] %s194_s1 }
  0x21   :  { %v61_v12 = vsub.s32 %v58_v9, %v60_v10  ;;  %v152_v24 = vsub.s32 0, %v60_v10  ;;  %s269_s24 = scalar_lea.vmem %s195_s1, 32  ;;  %p274_p11 = scmp.lt.s32.totalorder %s195_s1, %s195_s1 }
  0x22   :  { %p270_p10 = scmp.ne.s32.totalorder %s195_s1, %s269_s24  ;;  %p275_p12 = scmp.lt.s32.totalorder %s269_s24, %s269_s24 }
  0x24   :  { %49 = vadd.xlane.f32.xlu0 %v48_v5  ;;  %p276_p13 = por %p275_p12, %p274_p11 }
  0x26   :  { %p277_p0 = pnand %p276_p13, %p270_p10 }
  0xa9   :  { %v47_v11 = vpop.xlane.xlu0 %46 }
  0xaa   :  { %v52_v13 = vmul.f32 0.00390625, %v47_v11 }
  0xac   :  { %v62_v16 = vrot.slane %v52_v13, %v61_v12 }
  0xad   :  { %v50_v14 = vpop.xlane.xlu0 %49 }
  0xae   :  { %v53_v15 = vmul.f32 0.00390625, %v50_v14 }
  0xb0   :  { %v66_v17 = vrot.slane %v53_v15, %v61_v12 }
  0xb2   :  { %v68_v18 = vsel %vm67_vm1, %v66_v17, %v62_v16 }
  0xb3   :  { %215 = vmatmul.mubr.msk.f32.vlgmr.msra.gmra.mxu0 %vm69_vm2, %v68_v18 }
 0x173   :  { %v138_v19 = vpop.f32.mrf.mxu0 }
 0x174   :  { %v209_v20 = vmul.f32 -1.442695, %v138_v19  ;;  %143 = vst.msk [vmem:[#allocation8] sm:$0x3] %vm142_vm3, %v138_v19 }
 0x175   :  { %v216_v21 = vpop.f32.mrf.mxu0 }
 0x176   :  { %225 = vpow2.f32 %v209_v20 }
 0x183   :  { %v226_v22 = vpop.eup %225 }
 0x184   :  { %v147_v23 = vadd.f32 1.0, %v226_v22 }
 0x186   :  { %227 = vrcp.f32 %v147_v23 }
 0x187   :  { %280 = shalt.err (!%p277_p0)
}
 0x188   :  { %197 = dma.vmem_to_hbm [thread:$0]  %s195_s1, 32, %s366_s3, [#allocation9]   ;;  %v159_v27 = vsub.s32 1, %v60_v10 }
 0x189   :  { %s324_s27 = smov [#allocation7]  }
 0x18a   :  { %s181_s28 = sshll.u32 %s324_s27, 4  ;;  %s182_s28 = int_to_ptr.vmem [resolvable:$true] %s181_s28 }
 0x18b   :  { %s289_s3 = scalar_lea.vmem %s182_s28, 512  ;;  %p294_p2 = scmp.lt.s32.totalorder %s182_s28, %s182_s28 }
 0x18c   :  { %p290_p1 = scmp.ne.s32.totalorder %s182_s28, %s289_s3  ;;  %p295_p3 = scmp.lt.s32.totalorder %s289_s3, %s289_s3 }
 0x18e   :  { %p296_p4 = por %p295_p3, %p294_p2 }
 0x190   :  { %p297_p5 = pnand %p296_p4, %p290_p1 }
 0x193   :  { %v228_v25 = vpop.eup %227 }
 0x194   :  { %v153_v26 = vrot.slane %v228_v25, %v152_v24  ;;  %v160_v28 = vrot.slane %v228_v25, %v159_v27 }
 0x196   :  { %155 = vbcast.lane.b32.xlu1 %v153_v26, 256 }
 0x19a   :  { %162 = vbcast.lane.b32.xlu1 %v160_v28, 256 }
 0x208   :  { %v156_v29 = vpop.permute.xlu1 %155 }
 0x209   :  { %v168_v30 = vmul.f32 %v156_v29, %v41_v0  ;;  %v169_v31 = vmul.f32 %v156_v29, %v42_v1 }
 0x20b   :  { %172 = vst [vmem:[#allocation7] sm:$0xff] %v168_v30  ;;  %173 = vst [vmem:[#allocation7 + $0x8] sm:$0xff] %v169_v31 }
 0x20c   :  { %v163_v32 = vpop.permute.xlu1 %162 }
 0x20d   :  { %v170_v33 = vmul.f32 %v163_v32, %v43_v2  ;;  %v171_v34 = vmul.f32 %v163_v32, %v44_v4 }
 0x20f   :  { %174 = vst [vmem:[#allocation7 + $0x10] sm:$0xff] %v170_v33  ;;  %175 = vst [vmem:[#allocation7 + $0x18] sm:$0xff] %v171_v34 }
 0x210   :  { %300 = shalt.err (!%p297_p5)
}
 0x211   :  { %187 = dma.vmem_to_hbm [thread:$0]  %s182_s28, 512, %s365_s2, [#allocation4], %s318_s15, %s318_s15, %s319_s16  }
 0x212   :  { %313 = dma.done.wait [#allocation4], 512  }
 0x213   :  { %314 = vsyncadd [#allocation4], 4294966784 }
 0x214   :  { %315 = dma.done.wait [#allocation9], 32  }
 0x215   :  { %316 = vsyncadd [#allocation9], 4294967264 }
 0x216   :  { %204 = vsyncpa [#allocation3], 1 }
 0x217   :  { %205 = vsyncpa [#allocation6], 1 }
 0x218   :  { %206 = vsyncpa [#allocation4], 1 }
 0x219   :  { %207 = vsyncpa [#allocation9], 1 }

</bundles_post_ra>
